<compile_context>
chip_gen: v7x
topology: tpu7x:2x2x1
jax: 0.10.0
libtpu: 0.0.40
codegen_flags: <defaults>
</compile_context>

<pallas_src>
import functools

import jax
import jax.numpy as jnp
from jax import lax
from jax.experimental import pallas as pl
from jax.experimental.pallas import tpu as pltpu


# ----------------------------------------------------------------------------
# small helpers
# ----------------------------------------------------------------------------
def _pick_tile(n, target):
    """Largest multiple-of-128 tile <= target that divides n (else whole n)."""
    if n % 128 != 0:
        return n
    t = min(n, max(128, (target // 128) * 128))
    while n % t != 0:
        t -= 128
    return t


def _vmem_capacity_bytes():
    """Physical VMEM per core (generation-aware), conservative fallback."""
    try:
        cap = int(getattr(pltpu.get_tpu_info(), "vmem_capacity_bytes", 0) or 0)
        if cap > 0:
            return cap
    except Exception:
        pass
    return 64 * 1024 * 1024          # v7x per-core size; safe lower bound


def _vmem_limit(requested_bytes, cap):
    """Scoped-VMEM request clamped to ~85% of physical (Mosaic headroom)."""
    return int(min(max(requested_bytes, 16 * 1024 * 1024), int(cap * 0.85)))


# ----------------------------------------------------------------------------
# CAM: squeeze-and-excitation channel attention
#   gap = mean over spatial dims; h = relu(W1 gap + b1); s = sigmoid(W2 h + b2)
#   out = x * s   (per-channel scale)
# ----------------------------------------------------------------------------
def _cam_gap_kernel(x_ref, gap_ref, *, inv_hw):
    t = pl.program_id(1)

    @pl.when(t == 0)
    def _():
        gap_ref[...] = jnp.zeros_like(gap_ref)

    # accumulate the per-channel spatial sum directly in the resident output
    gap_ref[0] += jnp.sum(x_ref[0], axis=1, keepdims=True)            # (C, 1)

    @pl.when(t == pl.num_programs(1) - 1)
    def _():
        gap_ref[0] = gap_ref[0] * inv_hw


def _cam_fc_kernel(gap_ref, w1_ref, b1_ref, w2_ref, b2_ref, s_ref):
    # batched SE MLP: (B,C)@(C,Cr) and (B,Cr)@(Cr,C), contraction on the last
    # axis of both operands (trans_b form, MXU-native).
    h = lax.dot_general(gap_ref[...], w1_ref[...],
                        (((1,), (1,)), ((), ())),
                        preferred_element_type=jnp.float32) + b1_ref[...]
    h = jnp.maximum(h, 0.0)                                            # (B, Cr)
    z = lax.dot_general(h, w2_ref[...],
                        (((1,), (1,)), ((), ())),
                        preferred_element_type=jnp.float32) + b2_ref[...]
    s_ref[...] = 1.0 / (1.0 + jnp.exp(-z))                             # (B, C)


def _cam_scale_kernel(x_ref, s_ref, o_ref):
    o_ref[0] = x_ref[0] * s_ref[0]                                     # (C,T)*(C,1)


def cam_forward(x_nchw, w1, b1, w2, b2, *, hw_tile=2048):
    B, C, H, W = x_nchw.shape
    HW = H * W
    Cr = w1.shape[0]
    cap = _vmem_capacity_bytes()

    # CAM is HBM-bound: size the tile by bytes (big blocks amortize per-step
    # overhead) while keeping ~5 live (C, T) f32 buffers under ~half of VMEM.
    byte_cap_t = max(128, (int(0.5 * cap) // (5 * C * 4)) // 128 * 128)
    T = _pick_tile(HW, min(hw_tile, byte_cap_t))
    x = x_nchw.reshape(B, C, HW).astype(jnp.float32)
    # NOTE: if the surrounding model tolerates bf16 activations, streaming x in
    # bf16 here would roughly halve the HBM traffic of this (pure-bandwidth)
    # branch; kept f32 to match the reference numerics.

    vmem_limit = _vmem_limit(5 * C * T * 4 + (2 << 20), cap)

    # pass 1: per-batch spatial mean
    gap = pl.pallas_call(
        functools.partial(_cam_gap_kernel, inv_hw=1.0 / HW),
        out_shape=jax.ShapeDtypeStruct((B, C, 1), jnp.float32),
        grid=(B, HW // T),
        in_specs=[pl.BlockSpec((1, C, T), lambda b, t: (b, 0, t))],
        out_specs=pl.BlockSpec((1, C, 1), lambda b, t: (b, 0, 0)),
        compiler_params=pltpu.CompilerParams(
            dimension_semantics=("parallel", "arbitrary"),
            vmem_limit_bytes=vmem_limit),
    )(x)

    # pass 2: tiny batched SE MLP (single grid step; FC weights only live here)
    fc_vmem = _vmem_limit((2 * Cr * C + B * (2 * C + Cr)) * 4 + (2 << 20), cap)
    s = pl.pallas_call(
        _cam_fc_kernel,
        out_shape=jax.ShapeDtypeStruct((B, C), jnp.float32),
        compiler_params=pltpu.CompilerParams(vmem_limit_bytes=fc_vmem),
    )(gap.reshape(B, C), w1, b1.reshape(1, Cr), w2, b2.reshape(1, C))

    # pass 3: lane-dense per-channel scale (s is loop-invariant over t ->
    # single-buffered to avoid wasting VMEM on a pointless double buffer)
    out = pl.pallas_call(
        _cam_scale_kernel,
        out_shape=jax.ShapeDtypeStruct((B, C, HW), jnp.float32),
        grid=(B, HW // T),
        in_specs=[
            pl.BlockSpec((1, C, T), lambda b, t: (b, 0, t)),
            pl.BlockSpec((1, C, 1), lambda b, t: (b, 0, 0),
                         pipeline_mode=pl.Buffered(1)),
        ],
        out_specs=pl.BlockSpec((1, C, T), lambda b, t: (b, 0, t)),
        compiler_params=pltpu.CompilerParams(
            dimension_semantics=("parallel", "parallel"),
            vmem_limit_bytes=vmem_limit),
    )(x, s.reshape(B, C, 1))
    return out.reshape(B, C, H, W)


# ----------------------------------------------------------------------------
# SAM: DANet spatial attention, query-tiled.
#   p1 = W1 x + b1 (C/8,N) ; p2 = W2 x + b2 (C/8,N) ; p3 = W3 x + b3 (C,N)
#   rel  = p1^T p2 (N,N);  attn = softmax(rel, -1);  refine = p3 attn^T (C,N)
#   out  = gamma * refine + x
#
# Kernel inputs per (b, q) grid step (all projections precomputed in bf16):
#   p1  tile (1, C8, Tq)              -- query projection slab
#   p2t      (1, N,  C8)  resident    -- key projection, pre-transposed
#   p3       (1, C,  N )  resident    -- value projection
#   x   tile (1, C,  Tq)              -- residual
# Both matmuls are canonical (M,K)x(K,N) -> no in-kernel transposes; softmax is
# over the sublane (key) axis so its stats land in (1, Tq) lane layout and the
# normalization can be applied to the small (C, Tq) refine result.
# ----------------------------------------------------------------------------
def _sam_attn_kernel(p1_ref, p2t_ref, p3_ref, x_ref, gamma_ref, o_ref):
    # rel[j, i] = sum_c p2[c, j] * p1[c, i]   (keys j on sublanes, queries i on lanes)
    rel = jnp.dot(p2t_ref[0], p1_ref[0],
                  preferred_element_type=jnp.float32)                  # (N, Tq)
    m = jnp.max(rel, axis=0, keepdims=True)                            # (1, Tq)
    e = jnp.exp(rel - m)                                               # (N, Tq)
    denom = jnp.sum(e, axis=0, keepdims=True)                          # (1, Tq)
    # Deferred softmax normalization: matmul with the raw exponentials, then
    # rescale the (C, Tq) result (removes an (N, Tq)-wide VPU multiply + store).
    refine = jnp.dot(p3_ref[0], e.astype(jnp.bfloat16),
                     preferred_element_type=jnp.float32)               # (C, Tq)
    refine = refine * pl.reciprocal(denom, approx=True)                # bcast over C
    o_ref[0] = gamma_ref[0] * refine + x_ref[0]


def _sam_q_tile(N, C, C8, q_tile, cap):
    """Pick the query tile so the live working set fits the VMEM budget."""
    def est(t):
        return (C * N * 2 + N * C8 * 2          # p3 / p2t residents (single-buffered)
                + 2 * C8 * t * 2                # p1 tiles (double-buffered)
                + 4 * C * t * 4                 # x + out tiles (double-buffered)
                + 3 * N * t * 4 + N * t * 2     # rel / e f32 + bf16 copy of e
                + C * t * 4)                    # refine
    tq = _pick_tile(N, q_tile)
    while N % 128 == 0 and tq > 128 and est(tq) > int(0.55 * cap):
        nxt = _pick_tile(N, tq - 128)
        if nxt >= tq:
            break
        tq = nxt
    return tq


def sam_forward(x_nchw, w1, b1, w2, b2, w3, b3, gamma, *, q_tile=512):
    B, C, H, W = x_nchw.shape
    N = H * W
    C8 = w1.shape[0]
    cap = _vmem_capacity_bytes()
    Tq = _sam_q_tile(N, C, C8, q_tile, cap)
    QT = N // Tq

    x = x_nchw.reshape(B, C, N).astype(jnp.float32)
    xb = x.astype(jnp.bfloat16)
    w1b, w2b, w3b = (w.astype(jnp.bfloat16) for w in (w1, w2, w3))

    # 1x1-conv projections hoisted out of the attention kernel (plain XLA bf16
    # GEMMs with f32 accumulation).  This removes the per-batch q==0 cold-start
    # bubble and the resident f32 x copy, and leaves the q axis scratch-free so
    # it can be sharded across TensorCores.  p2 is produced pre-transposed so
    # the in-kernel rel matmul needs no transpose either.
    p1 = (jnp.einsum('oc,bcn->bon', w1b, xb,
                     preferred_element_type=jnp.float32)
          + b1[None, :, None]).astype(jnp.bfloat16)                    # (B, C8, N)
    p2t = (jnp.einsum('oc,bcn->bno', w2b, xb,
                      preferred_element_type=jnp.float32)
           + b2[None, None, :]).astype(jnp.bfloat16)                   # (B, N, C8)
    p3 = (jnp.einsum('oc,bcn->bon', w3b, xb,
                     preferred_element_type=jnp.float32)
          + b3[None, :, None]).astype(jnp.bfloat16)                    # (B, C, N)

    est = (C * N * 2 + N * C8 * 2 + 2 * C8 * Tq * 2 + 4 * C * Tq * 4
           + 3 * N * Tq * 4 + N * Tq * 2 + C * Tq * 4)
    vmem_limit = _vmem_limit(est + (4 << 20), cap)

    out = pl.pallas_call(
        _sam_attn_kernel,
        out_shape=jax.ShapeDtypeStruct((B, C, N), jnp.float32),
        grid=(B, QT),
        in_specs=[
            pl.BlockSpec((1, C8, Tq), lambda b, q: (b, 0, q)),
            # batch-resident blocks: constant over q -> single-buffer them
            pl.BlockSpec((1, N, C8), lambda b, q: (b, 0, 0),
                         pipeline_mode=pl.Buffered(1)),
            pl.BlockSpec((1, C, N), lambda b, q: (b, 0, 0),
                         pipeline_mode=pl.Buffered(1)),
            pl.BlockSpec((1, C, Tq), lambda b, q: (b, 0, q)),
            pl.BlockSpec(memory_space=pltpu.MemorySpace.SMEM),  # gamma scalar
        ],
        out_specs=pl.BlockSpec((1, C, Tq), lambda b, q: (b, 0, q)),
        compiler_params=pltpu.CompilerParams(
            # no scratch carried across q -> both axes fully parallel (megacore)
            dimension_semantics=("parallel", "parallel"),
            vmem_limit_bytes=vmem_limit),
    )(p1, p2t, p3, x, gamma.reshape(1).astype(jnp.float32))
    return out.reshape(B, C, H, W)


# ----------------------------------------------------------------------------
# AttentionMap wrapper (dispatch mirrors the PyTorch module's forward)
# ----------------------------------------------------------------------------
class AttentionMapPallas:
    def __init__(self, attention_map, num_channels, key):
        self.attention_map = attention_map
        C = num_channels
        Cr = C // 2          # CAModule reduc_ratio = 2
        C8 = C // 8          # SAModule projection channels
        ks = jax.random.split(key, 8)
        sc = 0.1
        # CAModule params (nn.Linear shapes)
        self.ca_w1 = sc * jax.random.normal(ks[0], (Cr, C), jnp.float32)
        self.ca_b1 = sc * jax.random.normal(ks[1], (Cr,), jnp.float32)
        self.ca_w2 = sc * jax.random.normal(ks[2], (C, Cr), jnp.float32)
        self.ca_b2 = sc * jax.random.normal(ks[3], (C,), jnp.float32)
        # SAModule params (1x1 conv weights squeezed to (out, in))
        self.sa_w1 = sc * jax.random.normal(ks[4], (C8, C), jnp.float32)
        self.sa_b1 = sc * jax.random.normal(ks[5], (C8,), jnp.float32)
        self.sa_w2 = sc * jax.random.normal(ks[6], (C8, C), jnp.float32)
        self.sa_b2 = sc * jax.random.normal(ks[7], (C8,), jnp.float32)
        k2 = jax.random.split(ks[7], 3)
        self.sa_w3 = sc * jax.random.normal(k2[0], (C, C), jnp.float32)
        self.sa_b3 = sc * jax.random.normal(k2[1], (C,), jnp.float32)
        # Faithful to nn.Parameter(torch.zeros(1)); override to exercise SAM.
        self.sa_gamma = jnp.zeros((1,), jnp.float32)

    def __call__(self, feat_map, *, hw_tile=2048, q_tile=512):
        if self.attention_map == 'CAM':
            return cam_forward(feat_map, self.ca_w1, self.ca_b1,
                               self.ca_w2, self.ca_b2, hw_tile=hw_tile)
        elif self.attention_map == 'SAM':
            return sam_forward(feat_map, self.sa_w1, self.sa_b1,
                               self.sa_w2, self.sa_b2,
                               self.sa_w3, self.sa_b3, self.sa_gamma,
                               q_tile=q_tile)
        elif self.attention_map == 'FPA':
            # TODO(synk): FPAModule depends on get_norm() (undefined in the
            # reference source) plus bilinear Upsample + strided 7/5/3 convs;
            # not reproducible faithfully, so it is not implemented here.
            raise NotImplementedError("FPA branch not implemented")
        elif self.attention_map == 'None':
            return feat_map
        else:
            raise Exception(f'Unknown attention type : {self.attention_map}')


# ----------------------------------------------------------------------------
# Pure-JAX references for verification
# ----------------------------------------------------------------------------
def cam_ref(x, w1, b1, w2, b2):
    B, C, H, W = x.shape
    gap = x.reshape(B, C, -1).mean(axis=2)
    h = jax.nn.relu(gap @ w1.T + b1)
    s = jax.nn.sigmoid(h @ w2.T + b2)
    return x * s[:, :, None, None]


def sam_ref(x, w1, b1, w2, b2, w3, b3, gamma):
    B, C, H, W = x.shape
    xf = x.reshape(B, C, H * W)
    p1 = jnp.einsum('oc,bcn->bon', w1, xf) + b1[None, :, None]
    p2 = jnp.einsum('oc,bcn->bon', w2, xf) + b2[None, :, None]
    rel = jnp.einsum('bci,bcj->bij', p1, p2)
    attn = jax.nn.softmax(rel, axis=-1)
    p3 = jnp.einsum('oc,bcn->bon', w3, xf) + b3[None, :, None]
    refine = jnp.einsum('bcj,bij->bci', p3, attn)
    return (gamma[0] * refine + xf).reshape(B, C, H, W)


if __name__ == "__main__":
    key = jax.random.PRNGKey(0)
    kx, kp = jax.random.split(key)
    B, C, H, W = 2, 16, 16, 16
    x = jax.random.normal(kx, (B, C, H, W), jnp.float32)

    ok = True

    # CAM branch (f32 throughout; hw_tile=128 -> 2 HW tiles, exercises accum)
    mod = AttentionMapPallas('CAM', C, kp)
    out_cam = jax.block_until_ready(mod(x, hw_tile=128))
    ref_cam = cam_ref(x, mod.ca_w1, mod.ca_b1, mod.ca_w2, mod.ca_b2)
    ok &= bool(jnp.allclose(out_cam, ref_cam, atol=1e-4, rtol=1e-4))

    # SAM branch (bf16 MXU matmuls + approx reciprocal -> looser tolerance;
    # q_tile=128 -> 2 query tiles; gamma nonzero so the attention path matters)
    mod.attention_map = 'SAM'
    mod.sa_gamma = jnp.array([0.5], jnp.float32)
    out_sam = jax.block_until_ready(mod(x, q_tile=128))
    ref_sam = sam_ref(x, mod.sa_w1, mod.sa_b1, mod.sa_w2, mod.sa_b2,
                      mod.sa_w3, mod.sa_b3, mod.sa_gamma)
    ok &= bool(jnp.allclose(out_sam, ref_sam, atol=2e-2, rtol=2e-2))

    # 'None' branch
    mod.attention_map = 'None'
    out_none = jax.block_until_ready(mod(x))
    ok &= bool(jnp.array_equal(out_none, x))

    if ok:
        print("KERNEL_OK")
    else:
        print("KERNEL_MISMATCH")
</pallas_src>

<mosaic_0001>
module attributes {stable_mosaic.version = 11 : i64} {
  func.func @_cam_gap_kernel(%arg0: i32, %arg1: i32, %arg2: memref<1x16x128xf32, #tpu.memory_space<vmem>>, %arg3: memref<1x16x1xf32, #tpu.memory_space<vmem>>) attributes {dimension_semantics = [#tpu.dimension_semantics<parallel>, #tpu.dimension_semantics<arbitrary>], iteration_bounds = array<i64: 2, 2>, scalar_prefetch = 0 : i64, scratch_operands = 0 : i64, tpu.core_type = #tpu.core_type<tc>, window_params = [{transform_indices = @transform_0, window_bounds = array<i64: 1, 16, 128>}, {transform_indices = @transform_1, window_bounds = array<i64: 1, 16, 1>}]} {
    %c0_i32 = arith.constant 0 : i32
    %0 = arith.cmpi eq, %arg1, %c0_i32 : i32
    %1 = arith.extui %0 : i1 to i32
    %c0_i32_0 = arith.constant 0 : i32
    %2 = arith.cmpi ne, %1, %c0_i32_0 : i32
    scf.if %2 {
      %cst_10 = arith.constant 0.000000e+00 : f32
      %16 = vector.broadcast %cst_10 : f32 to vector<1x16x1xf32>
      %c0_11 = arith.constant 0 : index
      %c0_12 = arith.constant 0 : index
      %c0_13 = arith.constant 0 : index
      %17 = vector.load %arg3[%c0_11, %c0_12, %c0_13] : memref<1x16x1xf32, #tpu.memory_space<vmem>>, vector<1x16x1xf32>
      tpu.vector_store %arg3[%c0_11, %c0_12, %c0_13], %16 {strides = array<i32>} : memref<1x16x1xf32, #tpu.memory_space<vmem>>, vector<1x16x1xf32>,
    } else {
    }
    %c0 = arith.constant 0 : index
    %c0_1 = arith.constant 0 : index
    %c0_2 = arith.constant 0 : index
    %3 = vector.load %arg3[%c0, %c0_1, %c0_2] : memref<1x16x1xf32, #tpu.memory_space<vmem>>, vector<1x16x1xf32>
    %4 = vector.shape_cast %3 : vector<1x16x1xf32> to vector<16x1xf32>
    %c0_3 = arith.constant 0 : index
    %c0_4 = arith.constant 0 : index
    %c0_5 = arith.constant 0 : index
    %5 = vector.load %arg2[%c0_3, %c0_4, %c0_5] : memref<1x16x128xf32, #tpu.memory_space<vmem>>, vector<1x16x128xf32>
    %6 = vector.shape_cast %5 : vector<1x16x128xf32> to vector<16x128xf32>
    %cst = arith.constant dense<0.000000e+00> : vector<16xf32>
    %7 = vector.multi_reduction <add>, %6, %cst [1] : vector<16x128xf32> to vector<16xf32>
    %8 = vector.shape_cast %7 : vector<16xf32> to vector<16x1xf32>
    %9 = arith.addf %4, %8 : vector<16x1xf32>
    %c0_6 = arith.constant 0 : index
    %c0_7 = arith.constant 0 : index
    %c0_8 = arith.constant 0 : index
    %10 = vector.load %arg3[%c0_6, %c0_7, %c0_8] : memref<1x16x1xf32, #tpu.memory_space<vmem>>, vector<1x16x1xf32>
    %11 = vector.shape_cast %10 : vector<1x16x1xf32> to vector<16x1xf32>
    %12 = vector.shape_cast %9 : vector<16x1xf32> to vector<1x16x1xf32>
    tpu.vector_store %arg3[%c0_6, %c0_7, %c0_8], %12 {strides = array<i32>} : memref<1x16x1xf32, #tpu.memory_space<vmem>>, vector<1x16x1xf32>,
    %c1_i32 = arith.constant 1 : i32
    %13 = arith.cmpi eq, %arg1, %c1_i32 : i32
    %14 = arith.extui %13 : i1 to i32
    %c0_i32_9 = arith.constant 0 : i32
    %15 = arith.cmpi ne, %14, %c0_i32_9 : i32
    scf.if %15 {
      %c0_10 = arith.constant 0 : index
      %c0_11 = arith.constant 0 : index
      %c0_12 = arith.constant 0 : index
      %16 = vector.load %arg3[%c0_10, %c0_11, %c0_12] : memref<1x16x1xf32, #tpu.memory_space<vmem>>, vector<1x16x1xf32>
      %17 = vector.shape_cast %16 : vector<1x16x1xf32> to vector<16x1xf32>
      %cst_13 = arith.constant 3.906250e-03 : f32
      %18 = vector.broadcast %cst_13 : f32 to vector<16x1xf32>
      %19 = arith.mulf %17, %18 : vector<16x1xf32>
      %c0_14 = arith.constant 0 : index
      %c0_15 = arith.constant 0 : index
      %c0_16 = arith.constant 0 : index
      %20 = vector.load %arg3[%c0_14, %c0_15, %c0_16] : memref<1x16x1xf32, #tpu.memory_space<vmem>>, vector<1x16x1xf32>
      %21 = vector.shape_cast %20 : vector<1x16x1xf32> to vector<16x1xf32>
      %22 = vector.shape_cast %19 : vector<16x1xf32> to vector<1x16x1xf32>
      tpu.vector_store %arg3[%c0_14, %c0_15, %c0_16], %22 {strides = array<i32>} : memref<1x16x1xf32, #tpu.memory_space<vmem>>, vector<1x16x1xf32>,
    } else {
    }
    return
  }
  func.func @transform_0(%arg0: i32, %arg1: i32) -> (i32, i32, i32) {
    %c0_i32 = arith.constant 0 : i32
    %c0_i32_0 = arith.constant 0 : i32
    return %arg0, %c0_i32, %arg1 : i32, i32, i32
  }
  func.func @transform_1(%arg0: i32, %arg1: i32) -> (i32, i32, i32) {
    %c0_i32 = arith.constant 0 : i32
    %c0_i32_0 = arith.constant 0 : i32
    %c0_i32_1 = arith.constant 0 : i32
    return %arg0, %c0_i32, %c0_i32_0 : i32, i32, i32
  }
}

</mosaic_0001>

<bundles_post_ra>
// kernel: tpu_custom_call.1
= control target key start
LH: loop header
LB: loop body
LE: loop exit
PB: predicated region body
PF: predicated region fallthrough
CT: control target
= control target key end

     0   :  { %6 = vsyncpa [#allocation3], 0  ;;  %s619_s0 = inlined_call_operand.hbm [shape: f32[2,16,256], index: 0, kind: input, shape index: {}]   ;;  %s620_s1 = inlined_call_operand.vmem [shape: f32[2,16,1], index: 1, kind: output, shape index: {}]  }
   0x1   :  { %8 = vsyncpa [#allocation3 + $0x1], 0  ;;  %s466_s6 = smov 0   ;;  %s468_s7 = smov 0  }
   0x2   :  { %s470_s8 = smov 0   ;;  %s472_s9 = smov 0  }
   0x3   :  { %s474_s10 = smov 0   ;;  %s476_s11 = smov 0  }
   0x4   :  { %s478_s12 = smov 0   ;;  %s480_s13 = smov 0  }
   0x5 LB: > { %s262_s14 = sadd.s32 4294967295, %s449_s13   ;;  %s23_s15 = sadd.s32 1, %s441_s11  ;;  %s449_s13 = sphi %s480_s13, %s14_s13   ;;  %s445_s12 = sphi %s478_s12, %s631_s12   ;;  %s441_s11 = sphi %s476_s11, %s630_s11   ;;  %s437_s10 = sphi %s474_s10, %s629_s10   ;;  %s433_s9 = sphi %s472_s9, %s628_s9   ;;  %s429_s8 = sphi %s470_s8, %s627_s8   ;;  %s425_s7 = sphi %s468_s7, %s626_s7   ;;  %s421_s6 = sphi %s466_s6, %s625_s6  }
   0x6   : > { %p24_p0 = scmp.ge.s32.totalorder %s23_s15, 2  ;;  %s26_s16 = sadd.s32 1, %s445_s12 }
   0x7   : > { %s35_s17 = sadd.s32 1, %s429_s8  ;;  %p42_p1 = scmp.ne.s32.totalorder %s429_s8, %s425_s7 }
   0x8   : > { %s633_s15 = smov (%p24_p0, %s23_s15), 0  ;;  %s635_s16 = smov (!%p24_p0, %s26_s16), %s445_s12 }
   0x9   : > { %s31_s18 = ssub.s32 %s441_s11, %s633_s15  ;;  %p43_p2 = scmp.eq.s32.totalorder %s449_s13, 0 }
   0xa   : > { %p28_p3 = scmp.ge.s32.totalorder %s635_s16, 2  ;;  %p48_p4 = scmp.ne.s32.totalorder %s425_s7, %s421_s6 }
   0xb   : > { %p517_p5 = por %p43_p2, %p42_p1  ;;  %p49_p6 = scmp.eq.s32.totalorder %s262_s14, 0 }
   0xc   : > { %s637_s16 = smov (%p28_p3, %s635_s16), 0  ;;  %p284_p8 = scmp.lt.s32.totalorder %s449_s13, 4 }
   0xd   : > { %p523_p7 = por %p49_p6, %p48_p4  ;;  %s30_s21 = ssub.s32 %s445_s12, %s637_s16 }
   0xe   : > { %s32_s22 = sor.u32 %s31_s18, %s30_s21  ;;  %s98_s23 = sand.u32 1, %s429_s8  }
   0xf   : > { %p33_p9 = scmp.eq.s32.totalorder %s32_s22, 0  ;;  %s266_s24 = sshll.u32 %s98_s23, 4 }
  0x10   : > { %s267_s25 = sshll.u32 %s445_s12, 2  ;;  %s102_s29 = scalar_lea.vmem [#allocation2], %s266_s24 }
  0x11   : > { %s533_s26 = scalar_select %p33_p9, %s429_s8, %s35_s17  }
  0x12   : > { %s107_s27 = sadd.s32 %s441_s11, %s267_s25  ;;  %s110_s30 = sshll.u32 %s102_s29, 4  ;;  %s541_s30 = int_to_ptr.vmem [resolvable:$true] %s110_s30 }
  0x13   : > { %s268_s28 = sshll.u32 %s107_s27, 7  ;;  %p547_p10 = pnand %p284_p8, %p517_p5 }
  0x14   : > { %s539_s4 = scalar_lea.hbm %s619_s0, %s268_s28  ;;  %s552_s6 = scalar_lea.sflag [#allocation3], %s98_s23 }
  0x15   : > { %s353_s14 = scalar_lea.hbm %s539_s4, 256  ;;  %p355_p13 = pneg %p547_p10 }
  0x16   : > { %p354_p12 = scmp.ne.s32.totalorder %s539_s4, %s353_s14  ;;  %s358_s19 = scalar_lea.hbm %s619_s0, 1024 }
  0x17   : > { %p359_p2 = scmp.lt.u32.totalorder %s539_s4, %s619_s0  ;;  %p360_p3 = scmp.lt.u32.totalorder %s358_s19, %s353_s14 }
  0x18   : > { %p356_p0 = pnand %p355_p13, %p354_p12  ;;  %p362_p5 = scmp.lt.u32.totalorder %s353_s14, %s539_s4 }
  0x19   : > { %p361_p4 = por %p360_p3, %p359_p2 }
  0x1a   : > { %p357_p1 = pneg %p356_p0 }
  0x1b   : > { %p363_p6 = por %p362_p5, %p361_p4 }
  0x1d   : > { %p364_p8 = pnand %p363_p6, %p357_p1 }
  0x1f   : > { %367 = shalt.err (!%p364_p8)
}
  0x20   : > { %s368_s23 = scalar_lea.vmem %s541_s30, 256  ;;  %s451_s24 = smov [#allocation2]  }
  0x21   : > { %p369_p9 = scmp.ne.s32.totalorder %s541_s30, %s368_s23  ;;  %s373_s25 = sshll.u32 %s451_s24, 4  ;;  %s374_s25 = int_to_ptr.vmem [resolvable:$false] %s373_s25 }
  0x22   : > { %s375_s27 = scalar_lea.vmem %s374_s25, 512  ;;  %p376_p11 = scmp.lt.s32.totalorder %s541_s30, %s374_s25 }
  0x23   : > { %p371_p12 = pnand %p369_p9, %p355_p13  ;;  %p377_p2 = scmp.lt.s32.totalorder %s375_s27, %s368_s23 }
  0x25   : > { %p372_p0 = pneg %p371_p12  ;;  %p378_p3 = por %p377_p2, %p376_p11 }
  0x27   : > { %p379_p4 = pnand %p378_p3, %p372_p0 }
  0x29   : > { %382 = shalt.err (!%p379_p4)
}
  0x2a   : > { %s452_s28 = smov 256   ;;  %s453_s29 = smov 128  }
  0x2b   : > { %s454_s2 = smov 8   ;;  %p118_p13 = scmp.lt.s32.totalorder %s449_s13, 5 }
  0x2c   : > { %283 = dma.hbm_to_vmem [thread:$0]  (!%p547_p10), %s539_s4, 256, %s541_s30, %s552_s6, %s452_s28, %s453_s29, %s454_s2  }
  0x2d   : > { %p624_p1 = scmp.ge.s32.totalorder %s449_s13, 1 }
  0x2f   : > { %p119_p5 = pnand %p624_p1, %p118_p13 }
  0x30   : > { %s124_s3 = sand.u32 (!%p119_p5), 1, %s425_s7  }
  0x31   : > { %122 = sbr.rel (%p119_p5) target bundleno = 226 (0xe2), region = 24  ;;  %s270_s14 = sshll.u32 (!%p119_p5), %s124_s3, 4 }
  0x32   : > { %s125_s17 = scalar_lea.sflag (!%p119_p5), [#allocation3], %s124_s3  ;;  %s128_s18 = scalar_lea.vmem (!%p119_p5), [#allocation2], %s270_s14 }
  0x38   : > { %416 = dma.done.wait (%p523_p7), %s125_s17, 256  }
  0x39   : > { %418 = vsyncadd (%p523_p7), %s125_s17, 4294967040  ;;  %p147_p11 = scmp.lt.s32.totalorder %s437_s10, 1  ;;  %p273_p10 = scmp.ne.s32.totalorder %s433_s9, 0 }
  0x3a   : > { %vm156_vm0 = vcmask (!%p273_p10), 7168   ;;  %v455_v0 = vmov (!%p273_p10), 0.0  }
  0x3b   : > { %s639_s10 = smov (!%p147_p11, %s437_s10), 1  ;;  %155 = sbr.rel (%p273_p10) target bundleno = 66 (0x42), region = 32 }
  0x3c   : > { %s277_s30 = sshll.u32 %s639_s10, 4 }
  0x3d   : > { %s151_s6 = scalar_lea.vmem %s620_s1, %s277_s30 }
  0x3e   : > { %157 = vst.msk [vmem:[%s151_s6] sm:$0xff] (!%p273_p10), %vm156_vm0, %v455_v0  ;;  %158 = vst.msk [vmem:[%s151_s6 + $0x8] sm:$0xff] (!%p273_p10), %vm156_vm0, %v455_v0 }
  0x42 PF: > { %v161_v1 = vld [vmem:[%s128_s18] sm:$0xff]  ;;  %v162_v2 = vld [vmem:[%s128_s18 + $0x8] sm:$0xff]  ;;  %vm169_vm1 = vcmask 7168   ;;  %p274_p7 = scmp.ne.s32.totalorder %s433_s9, 1 }
  0x43   : > { %163 = vadd.xlane.f32.xlu0 %v161_v1 }
  0x45   : > { %v159_v3 = vld [vmem:[%s151_s6] sm:$0xff]  ;;  %v160_v6 = vld [vmem:[%s151_s6 + $0x8] sm:$0xff] }
  0x47   : > { %165 = vadd.xlane.f32.xlu0 %v162_v2 }
  0xd0   : > { %v164_v4 = vpop.xlane.xlu0 %163 }
  0xd1   : > { %v167_v5 = vadd.f32 %v164_v4, %v159_v3  ;;  %175 = sbr.rel (%p274_p7) target bundleno = 226 (0xe2), region = 36 }
  0xd3   : > { %170 = vst.msk [vmem:[%s151_s6] sm:$0xff] %vm169_vm1, %v167_v5 }
  0xd4   : > { %v166_v7 = vpop.xlane.xlu0 %165 }
  0xd5   : > { %v168_v8 = vadd.f32 %v166_v7, %v160_v6 }
  0xd7   : > { %171 = vst.msk [vmem:[%s151_s6 + $0x8] sm:$0xff] %vm169_vm1, %v168_v8 }
  0xda   : > { %v176_v9 = vld [vmem:[%s151_s6] sm:$0xff] }
  0xdb   : > { %v178_v11 = vmul.f32 0.00390625, %v176_v9 }
  0xdd   : > { %180 = vst.msk [vmem:[%s151_s6] sm:$0xff] %vm169_vm1, %v178_v11 }
  0xde   : > { %v177_v10 = vld [vmem:[%s151_s6 + $0x8] sm:$0xff] }
  0xdf   : > { %v179_v12 = vmul.f32 0.00390625, %v177_v10 }
  0xe1   : > { %181 = vst.msk [vmem:[%s151_s6 + $0x8] sm:$0xff] %vm169_vm1, %v179_v12 }
  0xe2 PF: > { %s14_s13 = sadd.s32 1, %s449_s13   ;;  %s625_s6 = smov %s425_s7 }
  0xe3   : > { %p11_p6 = scmp.ge.s32.totalorder %s14_s13, 6   ;;  %s626_s7 = smov %s429_s8 }
  0xe4   : > { %s627_s8 = smov %s533_s26  ;;  %s628_s9 = smov %s441_s11 }
  0xe5   : > { %s629_s10 = smov %s445_s12  ;;  %s630_s11 = smov %s633_s15 }
  0xe6   : > { %s631_s12 = smov %s637_s16  ;;  %13 = sbr.rel (!%p11_p6) target bundleno = 5 (0x5), region = 72 }
  0xed   :  { %203 = vsyncpa [#allocation3], 1 }
  0xee   :  { %205 = vsyncpa [#allocation3 + $0x1], 1 }

</bundles_post_ra>
